<compile_context>
chip_gen: v5e
topology: v5e:2x2
jax: 0.10.0
libtpu: 0.0.40
codegen_flags: <defaults>
</compile_context>

<pallas_src>
import jax
import jax.numpy as jnp
from jax import lax
from jax.experimental import pallas as pl
from jax.experimental.pallas import tpu as pltpu


_LANE = 128
_SUBLANE = 8


def _round_up(x, m):
    return ((x + m - 1) // m) * m


def _vmem_budget_bytes():
    """Generation-aware scoped-VMEM budget (leave headroom under physical)."""
    try:
        cap = pltpu.get_tpu_info().vmem_capacity_bytes
    except Exception:
        cap = 64 * 1024 * 1024  # conservative (v7x-sized) fallback
    return int(cap * 3 // 4)


def _hgbcn2_kernel(hg_ref, item_ref, user_ref, w1_ref, w2_ref, b_ref,
                   norm_ref, msg_ref):
    """One U-tile of the HGBCN_2 forward pass.

    Grid axis 0 walks tiles of U.  norm_ref is a VMEM-resident accumulator
    (same output block index on every grid step).
    """
    u = pl.program_id(0)

    @pl.when(u == 0)
    def _():
        norm_ref[...] = jnp.zeros_like(norm_ref)

    # hyper_graph tile arrives as bf16 (0/1 entries -> exact); compute in f32
    # so results track the f32 reference.  (Fully-bf16 MXU inputs are a further
    # 2x compute option if looser accuracy is acceptable.)
    hg = hg_ref[...].astype(jnp.float32)                          # [TU, I]

    # node_msg = hg @ item_emb                                      [TU, D]
    node_msg = jnp.dot(hg, item_ref[...],
                       preferred_element_type=jnp.float32)

    # edge_node_element = node_msg * user_emb                       [TU, D]
    enel = node_msg * user_ref[...]

    # msg = cat([node_msg, enel], 1) @ W.T + b
    #     = node_msg @ W1 + enel @ W2 + b                           [TU, D]
    msg = (jnp.dot(node_msg, w1_ref[...], preferred_element_type=jnp.float32)
           + jnp.dot(enel, w2_ref[...], preferred_element_type=jnp.float32)
           + b_ref[...])
    msg_ref[...] = msg.astype(msg_ref.dtype)

    # norm_emb += hg.T @ msg, written as a contraction over axis 0 so the MXU
    # consumes the hg tile directly (no XLU transpose, no extra VMEM copy).
    norm_ref[...] += lax.dot_general(
        hg, msg,
        dimension_numbers=(((0,), (0,)), ((), ())),
        preferred_element_type=jnp.float32)


def prepare_params(weight, bias, d_pad):
    """One-time preprocessing of the nn.Linear(2D -> D) parameters.

    Splits the torch-layout [D, 2D] weight into the two [D, D] halves acting on
    node_msg / edge_node_element, transposes them to `x @ W` form and zero-pads
    the feature axes to the lane-padded width.  Do this ONCE outside the hot
    path so no transpose/copy ops run per forward call.
    """
    d = weight.shape[0]
    pad = ((0, d_pad - d), (0, d_pad - d))
    w1 = jnp.pad(weight[:, :d].T.astype(jnp.float32), pad)   # acts on node_msg
    w2 = jnp.pad(weight[:, d:].T.astype(jnp.float32), pad)   # acts on enel
    b = jnp.pad(bias.astype(jnp.float32), (0, d_pad - d)).reshape(1, d_pad)
    return w1, w2, b


def hgbcn2_forward(user_emb, item_emb, hyper_graph, w1, w2, b, *, tu=None):
    """Pallas implementation of HGBCN_2.forward.

    Args:
      user_emb:    [U, D] f32
      item_emb:    [I, D] f32
      hyper_graph: [U, I] f32 (dense 0/1 incidence matrix)
      w1, w2, b:   output of prepare_params (lane-padded linear params)
      tu:          optional U-tile size override (multiple of 8)
    Returns:
      (norm_emb [I, D], msg [U, D]) in float32.
    """
    U, D = user_emb.shape
    I = item_emb.shape[0]
    d_pad = w1.shape[0]
    assert hyper_graph.shape == (U, I)
    assert d_pad == _round_up(D, _LANE)

    i_pad = _round_up(I, _LANE)

    vmem_budget = _vmem_budget_bytes()
    if tu is None:
        # Bigger tiles where VMEM allows (v5e/v6e: 128 MiB); halve on v7x (64 MiB).
        tu = 256 if vmem_budget >= 72 * 1024 * 1024 else 128
    tu = _round_up(tu, _SUBLANE)
    tu = min(tu, _round_up(U, _SUBLANE))
    u_pad = _round_up(U, tu)
    num_u_tiles = u_pad // tu

    # Lane/sublane-friendly zero padding.  hyper_graph travels as bf16 (exact
    # for 0/1) to halve DMA traffic and VMEM footprint.
    hg_p = jnp.pad(hyper_graph.astype(jnp.bfloat16),
                   ((0, u_pad - U), (0, i_pad - I)))
    item_p = jnp.pad(item_emb.astype(jnp.float32),
                     ((0, i_pad - I), (0, d_pad - D)))
    user_p = jnp.pad(user_emb.astype(jnp.float32),
                     ((0, u_pad - U), (0, d_pad - D)))

    flops = (2 * u_pad * i_pad * d_pad        # hg @ item_emb
             + 2 * 2 * u_pad * d_pad * d_pad  # two linear matmuls
             + 2 * u_pad * i_pad * d_pad)     # hg^T @ msg
    bytes_accessed = (hg_p.size * 2 + item_p.size * 4 + user_p.size * 4
                      + (w1.size + w2.size + b.size) * 4
                      + i_pad * d_pad * 4 + u_pad * d_pad * 4)

    norm_p, msg_p = pl.pallas_call(
        _hgbcn2_kernel,
        out_shape=(
            jax.ShapeDtypeStruct((i_pad, d_pad), jnp.float32),   # norm_emb
            jax.ShapeDtypeStruct((u_pad, d_pad), jnp.float32),   # msg
        ),
        grid=(num_u_tiles,),
        in_specs=[
            pl.BlockSpec((tu, i_pad), lambda u: (u, 0)),         # hyper_graph tile
            pl.BlockSpec((i_pad, d_pad), lambda u: (0, 0)),      # item_emb (resident)
            pl.BlockSpec((tu, d_pad), lambda u: (u, 0)),         # user_emb tile
            pl.BlockSpec((d_pad, d_pad), lambda u: (0, 0)),      # w1 (resident)
            pl.BlockSpec((d_pad, d_pad), lambda u: (0, 0)),      # w2 (resident)
            pl.BlockSpec((1, d_pad), lambda u: (0, 0)),          # bias (resident)
        ],
        out_specs=(
            pl.BlockSpec((i_pad, d_pad), lambda u: (0, 0)),      # norm accumulator
            pl.BlockSpec((tu, d_pad), lambda u: (u, 0)),         # msg tile
        ),
        compiler_params=pltpu.CompilerParams(
            # U axis carries the norm_emb reduction -> must be "arbitrary".
            dimension_semantics=("arbitrary",),
            vmem_limit_bytes=vmem_budget),
        cost_estimate=pl.CostEstimate(
            flops=flops, transcendentals=0, bytes_accessed=bytes_accessed),
    )(hg_p, item_p, user_p, w1, w2, b)

    return norm_p[:I, :D], msg_p[:U, :D]


def _reference(user_emb, item_emb, hyper_graph, weight, bias):
    hp = lax.Precision.HIGHEST
    node_msg = jnp.dot(hyper_graph, item_emb, precision=hp)
    enel = node_msg * user_emb
    msg = jnp.dot(jnp.concatenate([node_msg, enel], axis=1), weight.T,
                  precision=hp) + bias
    norm_emb = jnp.dot(hyper_graph.T, msg, precision=hp)
    return norm_emb, msg


if __name__ == "__main__":
    key = jax.random.PRNGKey(0)
    dim = 32          # embedding dim D (lane-padded to 128 inside the wrapper)
    num_users = 200   # rows of hyper_graph (hyper-edges / users)
    num_items = 72    # cols of hyper_graph (nodes / items)

    k1, k2, k3, k4, k5 = jax.random.split(key, 5)
    user_emb = jax.random.normal(k1, (num_users, dim), dtype=jnp.float32)
    item_emb = jax.random.normal(k2, (num_items, dim), dtype=jnp.float32)
    # Synthetic sparse-ish 0/1 incidence matrix (dense storage).
    # TODO(synk): torch.sparse.mm has no sparse Pallas equivalent; the dense
    # bf16 incidence matrix is used instead (exact for 0/1 entries).
    hyper_graph = (jax.random.uniform(k3, (num_users, num_items)) < 0.3
                   ).astype(jnp.float32)
    # nn.Linear(2*dim, dim) parameters, deterministic init.
    bound = 1.0 / (2 * dim) ** 0.5
    weight = jax.random.uniform(k4, (dim, 2 * dim), minval=-bound, maxval=bound,
                                dtype=jnp.float32)
    bias = jax.random.uniform(k5, (dim,), minval=-bound, maxval=bound,
                              dtype=jnp.float32)

    # One-time parameter prep (split / transpose / pad the linear weight).
    w1, w2, b = prepare_params(weight, bias, _round_up(dim, _LANE))

    # tu=64 -> 4 U-tiles at this size: exercises the pipelined grid and the
    # resident norm_emb accumulator.
    norm_emb, msg = hgbcn2_forward(user_emb, item_emb, hyper_graph, w1, w2, b,
                                   tu=64)
    jax.block_until_ready((norm_emb, msg))

    ref_norm, ref_msg = _reference(user_emb, item_emb, hyper_graph, weight, bias)
    assert norm_emb.shape == (num_items, dim)
    assert msg.shape == (num_users, dim)
    assert jnp.allclose(msg, ref_msg, atol=2e-3, rtol=2e-3), (
        float(jnp.max(jnp.abs(msg - ref_msg))))
    assert jnp.allclose(norm_emb, ref_norm, atol=2e-3, rtol=2e-3), (
        float(jnp.max(jnp.abs(norm_emb - ref_norm))))

    print("KERNEL_OK")
</pallas_src>

<mosaic_0001>
module attributes {stable_mosaic.version = 11 : i64} {
  func.func @_hgbcn2_kernel(%arg0: i32, %arg1: memref<64x128xbf16, #tpu.memory_space<vmem>>, %arg2: memref<128x128xf32, #tpu.memory_space<vmem>>, %arg3: memref<64x128xf32, #tpu.memory_space<vmem>>, %arg4: memref<128x128xf32, #tpu.memory_space<vmem>>, %arg5: memref<128x128xf32, #tpu.memory_space<vmem>>, %arg6: memref<1x128xf32, #tpu.memory_space<vmem>>, %arg7: memref<128x128xf32, #tpu.memory_space<vmem>>, %arg8: memref<64x128xf32, #tpu.memory_space<vmem>>) attributes {dimension_semantics = [#tpu.dimension_semantics<arbitrary>], iteration_bounds = array<i64: 4>, scalar_prefetch = 0 : i64, scratch_operands = 0 : i64, tpu.core_type = #tpu.core_type<tc>, window_params = [{transform_indices = @transform_0, window_bounds = array<i64: 64, 128>}, {pipeline_mode = #tpu.pipeline_mode<synchronous>, transform_indices = @transform_1, window_bounds = array<i64: 128, 128>}, {transform_indices = @transform_2, window_bounds = array<i64: 64, 128>}, {pipeline_mode = #tpu.pipeline_mode<synchronous>, transform_indices = @transform_3, window_bounds = array<i64: 128, 128>}, {pipeline_mode = #tpu.pipeline_mode<synchronous>, transform_indices = @transform_4, window_bounds = array<i64: 128, 128>}, {pipeline_mode = #tpu.pipeline_mode<synchronous>, transform_indices = @transform_5, window_bounds = array<i64: 1, 128>}, {pipeline_mode = #tpu.pipeline_mode<synchronous>, transform_indices = @transform_6, window_bounds = array<i64: 128, 128>}, {transform_indices = @transform_7, window_bounds = array<i64: 64, 128>}]} {
    %c0_i32 = arith.constant 0 : i32
    %0 = arith.cmpi eq, %arg0, %c0_i32 : i32
    %1 = arith.extui %0 : i1 to i32
    %c0_i32_0 = arith.constant 0 : i32
    %2 = arith.cmpi ne, %1, %c0_i32_0 : i32
    scf.if %2 {
      %cst_21 = arith.constant 0.000000e+00 : f32
      %22 = vector.broadcast %cst_21 : f32 to vector<128x128xf32>
      %c0_22 = arith.constant 0 : index
      %c0_23 = arith.constant 0 : index
      %23 = vector.load %arg7[%c0_22, %c0_23] : memref<128x128xf32, #tpu.memory_space<vmem>>, vector<128x128xf32>
      tpu.vector_store %arg7[%c0_22, %c0_23], %22 {strides = array<i32>} : memref<128x128xf32, #tpu.memory_space<vmem>>, vector<128x128xf32>,
    } else {
    }
    %c0 = arith.constant 0 : index
    %c0_1 = arith.constant 0 : index
    %3 = vector.load %arg1[%c0, %c0_1] : memref<64x128xbf16, #tpu.memory_space<vmem>>, vector<64x128xbf16>
    %4 = arith.extf %3 : vector<64x128xbf16> to vector<64x128xf32>
    %c0_2 = arith.constant 0 : index
    %c0_3 = arith.constant 0 : index
    %5 = vector.load %arg2[%c0_2, %c0_3] : memref<128x128xf32, #tpu.memory_space<vmem>>, vector<128x128xf32>
    %cst = arith.constant dense<0.000000e+00> : vector<64x128xf32>
    %6 = tpu.matmul %4, %5, %cst {dimension_numbers = #tpu.dot_dimension_numbers<[1], [0], [0], [1], [0, 0, 1, 1], [], []>} : vector<64x128xf32>, vector<128x128xf32>, vector<64x128xf32> -> vector<64x128xf32>
    %c0_4 = arith.constant 0 : index
    %c0_5 = arith.constant 0 : index
    %7 = vector.load %arg3[%c0_4, %c0_5] : memref<64x128xf32, #tpu.memory_space<vmem>>, vector<64x128xf32>
    %8 = arith.mulf %6, %7 : vector<64x128xf32>
    %c0_6 = arith.constant 0 : index
    %c0_7 = arith.constant 0 : index
    %9 = vector.load %arg4[%c0_6, %c0_7] : memref<128x128xf32, #tpu.memory_space<vmem>>, vector<128x128xf32>
    %cst_8 = arith.constant dense<0.000000e+00> : vector<64x128xf32>
    %10 = tpu.matmul %6, %9, %cst_8 {dimension_numbers = #tpu.dot_dimension_numbers<[1], [0], [0], [1], [0, 0, 1, 1], [], []>} : vector<64x128xf32>, vector<128x128xf32>, vector<64x128xf32> -> vector<64x128xf32>
    %c0_9 = arith.constant 0 : index
    %c0_10 = arith.constant 0 : index
    %11 = vector.load %arg5[%c0_9, %c0_10] : memref<128x128xf32, #tpu.memory_space<vmem>>, vector<128x128xf32>
    %cst_11 = arith.constant dense<0.000000e+00> : vector<64x128xf32>
    %12 = tpu.matmul %8, %11, %cst_11 {dimension_numbers = #tpu.dot_dimension_numbers<[1], [0], [0], [1], [0, 0, 1, 1], [], []>} : vector<64x128xf32>, vector<128x128xf32>, vector<64x128xf32> -> vector<64x128xf32>
    %13 = arith.addf %10, %12 : vector<64x128xf32>
    %c0_12 = arith.constant 0 : index
    %c0_13 = arith.constant 0 : index
    %14 = vector.load %arg6[%c0_12, %c0_13] : memref<1x128xf32, #tpu.memory_space<vmem>>, vector<1x128xf32>
    %15 = vector.broadcast %14 : vector<1x128xf32> to vector<64x128xf32>
    %16 = arith.addf %13, %15 : vector<64x128xf32>
    %c0_14 = arith.constant 0 : index
    %c0_15 = arith.constant 0 : index
    %17 = vector.load %arg8[%c0_14, %c0_15] : memref<64x128xf32, #tpu.memory_space<vmem>>, vector<64x128xf32>
    tpu.vector_store %arg8[%c0_14, %c0_15], %16 {strides = array<i32>} : memref<64x128xf32, #tpu.memory_space<vmem>>, vector<64x128xf32>,
    %c0_16 = arith.constant 0 : index
    %c0_17 = arith.constant 0 : index
    %18 = vector.load %arg7[%c0_16, %c0_17] : memref<128x128xf32, #tpu.memory_space<vmem>>, vector<128x128xf32>
    %cst_18 = arith.constant dense<0.000000e+00> : vector<128x128xf32>
    %19 = tpu.matmul %4, %16, %cst_18 {dimension_numbers = #tpu.dot_dimension_numbers<[0], [0], [1], [1], [0, 1, 1, 1], [], []>} : vector<64x128xf32>, vector<64x128xf32>, vector<128x128xf32> -> vector<128x128xf32>
    %20 = arith.addf %18, %19 : vector<128x128xf32>
    %c0_19 = arith.constant 0 : index
    %c0_20 = arith.constant 0 : index
    %21 = vector.load %arg7[%c0_19, %c0_20] : memref<128x128xf32, #tpu.memory_space<vmem>>, vector<128x128xf32>
    tpu.vector_store %arg7[%c0_19, %c0_20], %20 {strides = array<i32>} : memref<128x128xf32, #tpu.memory_space<vmem>>, vector<128x128xf32>,
    return
  }
  func.func @transform_0(%arg0: i32) -> (i32, i32) {
    %c0_i32 = arith.constant 0 : i32
    %c0_i32_0 = arith.constant 0 : i32
    return %arg0, %c0_i32 : i32, i32
  }
  func.func @transform_1(%arg0: i32) -> (i32, i32) {
    %c0_i32 = arith.constant 0 : i32
    %c0_i32_0 = arith.constant 0 : i32
    %c0_i32_1 = arith.constant 0 : i32
    return %c0_i32, %c0_i32_0 : i32, i32
  }
  func.func @transform_2(%arg0: i32) -> (i32, i32) {
    %c0_i32 = arith.constant 0 : i32
    %c0_i32_0 = arith.constant 0 : i32
    return %arg0, %c0_i32 : i32, i32
  }
  func.func @transform_3(%arg0: i32) -> (i32, i32) {
    %c0_i32 = arith.constant 0 : i32
    %c0_i32_0 = arith.constant 0 : i32
    %c0_i32_1 = arith.constant 0 : i32
    return %c0_i32, %c0_i32_0 : i32, i32
  }
  func.func @transform_4(%arg0: i32) -> (i32, i32) {
    %c0_i32 = arith.constant 0 : i32
    %c0_i32_0 = arith.constant 0 : i32
    %c0_i32_1 = arith.constant 0 : i32
    return %c0_i32, %c0_i32_0 : i32, i32
  }
  func.func @transform_5(%arg0: i32) -> (i32, i32) {
    %c0_i32 = arith.constant 0 : i32
    %c0_i32_0 = arith.constant 0 : i32
    %c0_i32_1 = arith.constant 0 : i32
    return %c0_i32, %c0_i32_0 : i32, i32
  }
  func.func @transform_6(%arg0: i32) -> (i32, i32) {
    %c0_i32 = arith.constant 0 : i32
    %c0_i32_0 = arith.constant 0 : i32
    %c0_i32_1 = arith.constant 0 : i32
    return %c0_i32, %c0_i32_0 : i32, i32
  }
  func.func @transform_7(%arg0: i32) -> (i32, i32) {
    %c0_i32 = arith.constant 0 : i32
    %c0_i32_0 = arith.constant 0 : i32
    return %arg0, %c0_i32 : i32, i32
  }
}

</mosaic_0001>

<bundles_post_ra>
// kernel: tpu_custom_call.1
= control target key start
LH: loop header
LB: loop body
LE: loop exit
PB: predicated region body
PF: predicated region fallthrough
CT: control target
= control target key end

     0   :  { %s1790_s0 = inlined_call_operand.hbm [shape: bf16[256,128], index: 0, kind: input, shape index: {}]   ;;  %s1791_s1 = inlined_call_operand.hbm [shape: f32[128,128], index: 1, kind: input, shape index: {}]   ;;  %s1792_s2 = inlined_call_operand.hbm [shape: f32[256,128], index: 2, kind: input, shape index: {}]   ;;  %s1793_s3 = inlined_call_operand.hbm [shape: f32[128,128], index: 3, kind: input, shape index: {}]   ;;  %s1794_s4 = inlined_call_operand.hbm [shape: f32[128,128], index: 4, kind: input, shape index: {}]   ;;  %s1795_s5 = inlined_call_operand.vmem [shape: f32[1,128], index: 5, kind: input, shape index: {}]   ;;  %s1796_s6 = inlined_call_operand.hbm [shape: f32[128,128], index: 6, kind: output, shape index: {0}]   ;;  %s1797_s7 = inlined_call_operand.hbm [shape: f32[256,128], index: 7, kind: output, shape index: {1}]  }
   0x1   :  { %1808 = sst [smem:[#allocation25_spill]] %s1790_s0 }
   0x2   :  { %1809 = sst [smem:[#allocation26_spill]] %s1791_s1 }
   0x3   :  { %13 = vsyncpa [#allocation3], 0 }
   0x4   :  { %15 = vsyncpa [#allocation3 + $0x1], 0 }
   0x5   :  { %16 = vsyncpa [#allocation6], 0 }
   0x6   :  { %17 = vsyncpa [#allocation10], 0 }
   0x7   :  { %18 = vsyncpa [#allocation4], 0 }
   0x8   :  { %19 = vsyncpa [#allocation13], 0 }
   0x9   :  { %21 = vsyncpa [#allocation13 + $0x1], 0  ;;  %s1497_s24 = smov 0   ;;  %s1499_s25 = smov 0  }
   0xa   :  { %s1501_s26 = smov 0   ;;  %s1503_s27 = smov 0  }
   0xb LB: > { %1810 = sst [smem:[#allocation21_spill]] %s1440_s26  ;;  %s1518_s28 = sadd.s32 4294967295, %s1444_s27   ;;  %s1444_s27 = sphi %s1503_s27, %s1835_s27   ;;  %s1440_s26 = sphi %s1501_s26, %s1837_s26   ;;  %s1436_s25 = sphi %s1499_s25, %s1839_s25   ;;  %s1432_s24 = sphi %s1497_s24, %s1838_s24  }
   0xc   : > { %s993_s29 = sadd.s32 4294967294, %s1444_s27   ;;  %p47_p0 = scmp.ne.s32.totalorder %s1436_s25, %s1432_s24 }
   0xd   : > { %p1806_p1 = scmp.eq.s32.totalorder %s1518_s28, 0  ;;  %p1805_p2 = scmp.eq.s32.totalorder %s1518_s28, 3 }
   0xe   : > { %p208_p3 = scmp.eq.s32.totalorder %s993_s29, 3  ;;  %p994_p5 = scmp.ge.s32.totalorder %s1444_s27, 1 }
   0xf   : > { %p1527_p4 = por %p1806_p1, %p47_p0  ;;  %p215_p7 = scmp.lt.s32.totalorder %s1444_s27, 5 }
  0x10   : > { %p1532_p6 = por %p208_p3, %p47_p0  ;;  %s1814_s1 = sld [smem:[#allocation26_spill]] }
  0x11   : > { %p1541_p9 = pnand %p994_p5, %p215_p7  ;;  %s1446_s13 = smov [#allocation5]  }
  0x12   : > { %s1812_s8 = scalar_select %p1532_p6, 1, 0 }
  0x13   : > { %p1104_p10 = pneg %p1541_p9  ;;  %s228_s14 = sshll.u32 %s1446_s13, 4  ;;  %s229_s14 = int_to_ptr.vmem [resolvable:$true] %s228_s14 }
  0x14   : > { %1813 = sst [smem:[#allocation22_spill]] %s1812_s8  ;;  %s1554_s16 = sadd.s32 1, %s1444_s27  }
  0x15   : > { %p1549_p11 = pnand %p1104_p10, %p1806_p1  ;;  %1817 = sst [smem:[#allocation23_spill]] %s1554_s16 }
  0x16   : > { %s226_s11 = sshll.u32 %s1814_s1, 4  ;;  %s1798_s17 = smov 128   ;;  %s227_s11 = int_to_ptr.hbm [resolvable:$true] %s226_s11 }
  0x17   : > { %s1800_s18 = smov 8   ;;  %s31_s19 = ssub.s32 %s1444_s27, %s1554_s16 }
  0x18   : > { %1107 = dma.hbm_to_vmem [thread:$0]  (!%p1549_p11), %s227_s11, 2048, %s229_s14, [#allocation6], %s1798_s17, %s1798_s17, %s1800_s18  }
  0x19   : > { %s34_s20 = sadd.s32 1, %s1440_s26  ;;  %p32_p12 = scmp.eq.s32.totalorder %s31_s19, 0 }
  0x1a   : > { %p41_p13 = scmp.ne.s32.totalorder %s1440_s26, %s1436_s25  ;;  %p42_p0 = scmp.eq.s32.totalorder %s1444_s27, 0 }
  0x1b   : > { %p1128_p3 = scmp.lt.s32.totalorder %s1444_s27, 4  ;;  %s273_s23 = sand.u32 1, %s1444_s27  }
  0x1c   : > { %s1569_s21 = scalar_select %p32_p12, %s1440_s26, %s34_s20  }
  0x1d   : > { %p43_p5 = por %p42_p0, %p41_p13  ;;  %p1573_p7 = por %p1805_p2, %p41_p13 }
  0x1e   : > { %1818 = sst [smem:[#allocation24_spill]] %s1569_s21  ;;  %s275_s29 = sand.u32 1, %s1440_s26  }
  0x1f   : > { %s999_s9 = sshll.u32 %s275_s29, 5  ;;  %s1036_s10 = sshll.u32 %s1444_s27, 5 }
  0x20   : > { %s1820_s0 = sld [smem:[#allocation25_spill]]  ;;  %s277_s19 = scalar_lea.vmem [#allocation2], %s999_s9 }
  0x21   : > { %s285_s17 = sshll.u32 %s277_s19, 4  ;;  %p1585_p10 = pnand %p1128_p3, %p43_p5  ;;  %s286_s17 = int_to_ptr.vmem [resolvable:$true] %s285_s17 }
  0x22   : > { %s1002_s1 = sshll.u32 %s275_s29, 6  ;;  %s1589_s21 = scalar_lea.sflag [#allocation3], %s273_s23 }
  0x23   : > { %p1214_p13 = pneg %p1585_p10 }
  0x26   : > { %s282_s14 = scalar_lea.hbm %s1820_s0, %s1036_s10  ;;  %s1217_s11 = scalar_lea.hbm %s1820_s0, 128 }
  0x27   : > { %s283_s18 = sshll.u32 %s282_s14, 4  ;;  %s284_s18 = int_to_ptr.hbm [resolvable:$true] %s283_s18 }
  0x28   : > { %s1210_s26 = sshra.s32 %s284_s18, 4  ;;  %s1211_s26 = int_to_ptr.hbm [resolvable:$true] %s1210_s26 }
  0x29   : > { %s1212_s16 = scalar_lea.hbm %s1211_s26, 32  ;;  %p1218_p3 = scmp.lt.s32.totalorder %s1211_s26, %s1820_s0 }
  0x2a   : > { %p1213_p12 = scmp.ne.s32.totalorder %s1211_s26, %s1212_s16  ;;  %p1219_p5 = scmp.lt.s32.totalorder %s1217_s11, %s1212_s16 }
  0x2c   : > { %p1215_p0 = pnand %p1214_p13, %p1213_p12  ;;  %p1220_p8 = por %p1219_p5, %p1218_p3 }
  0x2e   : > { %p1216_p2 = pneg %p1215_p0 }
  0x30   : > { %p1221_p1 = pnand %p1220_p8, %p1216_p2 }
  0x32   : > { %1224 = shalt.err (!%p1221_p1)
}
  0x33   : > { %s1449_s23 = smov 64   ;;  %s1450_s29 = smov 4  }
  0x34   : > { %1117 = dma.hbm_to_vmem [thread:$0]  (!%p1585_p10), %s284_s18, 512, %s286_s17, %s1589_s21, %s1449_s23, %s1449_s23, %s1450_s29  }
  0x35   : > { %s240_s9 = sshll.u32 %s1793_s3, 4  ;;  %s299_s10 = scalar_lea.vmem [#allocation7], %s1002_s1  ;;  %s241_s9 = int_to_ptr.hbm [resolvable:$true] %s240_s9 }
  0x36   : > { %s1608_s13 = sshll.u32 %s299_s10, 4  ;;  %s254_s11 = sshll.u32 %s1794_s4, 4  ;;  %s255_s11 = int_to_ptr.hbm [resolvable:$true] %s254_s11  ;;  %s308_s13 = int_to_ptr.vmem [resolvable:$true] %s1608_s13 }
  0x37   : > { %s1451_s14 = smov [#allocation8]   ;;  %s1822_s17 = smov 8  }
  0x38   : > { %s242_s0 = sshll.u32 %s1451_s14, 4  ;;  %s1823_s18 = smov 128   ;;  %s243_s0 = int_to_ptr.vmem [resolvable:$true] %s242_s0 }
  0x39   : > { %1110 = dma.hbm_to_vmem [thread:$0]  (!%p1549_p11), %s241_s9, 2048, %s243_s0, [#allocation6], %s1823_s18, %s1823_s18, %s1822_s17  }
  0x3a   : > { %s1452_s8 = smov [#allocation9]   ;;  %s1037_s23 = sshll.u32 %s1444_s27, 6 }
  0x3b   : > { %s256_s1 = sshll.u32 %s1452_s8, 4  ;;  %s304_s10 = scalar_lea.hbm %s1792_s2, %s1037_s23  ;;  %s257_s1 = int_to_ptr.vmem [resolvable:$true] %s256_s1 }
  0x3c   : > { %1113 = dma.hbm_to_vmem [thread:$0]  (!%p1549_p11), %s255_s11, 2048, %s257_s1, [#allocation10], %s1823_s18, %s1823_s18, %s1822_s17  }
  0x3d   : > { %s305_s26 = sshll.u32 %s304_s10, 4  ;;  %s1307_s8 = scalar_lea.hbm %s1792_s2, 256  ;;  %s306_s26 = int_to_ptr.hbm [resolvable:$true] %s305_s26 }
  0x3e   : > { %s1300_s16 = sshra.s32 %s306_s26, 4  ;;  %s1301_s16 = int_to_ptr.hbm [resolvable:$true] %s1300_s16 }
  0x3f   : > { %s1302_s14 = scalar_lea.hbm %s1301_s16, 64  ;;  %p1308_p12 = scmp.lt.s32.totalorder %s1301_s16, %s1792_s2 }
  0x40   : > { %p1303_p1 = scmp.ne.s32.totalorder %s1301_s16, %s1302_s14  ;;  %p1309_p11 = scmp.lt.s32.totalorder %s1307_s8, %s1302_s14 }
  0x42   : > { %p1305_p2 = pnand %p1303_p1, %p1214_p13  ;;  %p1310_p0 = por %p1309_p11, %p1308_p12 }
  0x44   : > { %p1306_p8 = pneg %p1305_p2 }
  0x46   : > { %p1311_p3 = pnand %p1310_p0, %p1306_p8 }
  0x48   : > { %1314 = shalt.err (!%p1311_p3)
}
  0x49   : > { %1120 = dma.hbm_to_vmem [thread:$0]  (!%p1585_p10), %s306_s26, 1024, %s308_s13, %s1589_s21, %s1823_s18, %s1823_s18, %s1822_s17  }
  0x4a   : > { %319 = sbr.rel (%p1541_p9) target bundleno = 710 (0x2c6), region = 44  ;;  %s321_s11 = sand.u32 (!%p1541_p9), 1, %s1518_s28  }
  0x4b   : > { %s1647_s1 = sand.u32 (!%p1541_p9), 1, %s1436_s25   ;;  %s322_s19 = scalar_lea.sflag (!%p1541_p9), [#allocation3], %s321_s11 }
  0x4c   : > { %s1006_s29 = sshll.u32 (!%p1541_p9), %s1647_s1, 5 }
  0x4d   : > { %s1650_s10 = scalar_lea.vmem (!%p1541_p9), [#allocation2], %s1006_s29 }
  0x4f   : > { %1403 = dma.done.wait (%p1527_p4), %s322_s19, 512  }
  0x50   : > { %1405 = vsyncadd (%p1527_p4), %s322_s19, 4294966784  ;;  %p1824_p10 = scmp.eq.s32.totalorder %s1518_s28, 0 }
  0x52   : > { %1407 = dma.done.wait (%p1824_p10), [#allocation6], 2048   ;;  %p1825_p9 = pmov %p1824_p10 }
  0x53   : > { %s1008_s12 = sshll.u32 %s1647_s1, 6 }
  0x54   : > { %1409 = vsyncadd (%p1825_p9), [#allocation6], 4294965248  ;;  %s1661_s21 = scalar_lea.vmem [#allocation7], %s1008_s12 }
  0x55   : > { %1411 = dma.done.wait (%p1527_p4), %s322_s19, 1024  }
  0x56   : > { %1413 = vsyncadd (%p1527_p4), %s322_s19, 4294966272  ;;  %p1826_p13 = pmov %p1825_p9 }
  0x57   : > { %p1827_p5 = pmov %p1825_p9 }
  0x58   : > { %1415 = dma.done.wait (%p1826_p13), [#allocation6], 2048  }
  0x59   : > { %1417 = vsyncadd (%p1827_p5), [#allocation6], 4294965248  ;;  %p1828_p1 = pmov %p1827_p5 }
  0x5b   : > { %1419 = dma.done.wait (%p1828_p1), [#allocation10], 2048   ;;  %p1829_p2 = pmov %p1828_p1 }
  0x5c   : > { %s1675_s20 = scalar_lea.vmem [#allocation12], %s1008_s12  ;;  %p1830_p8 = scmp.ne.s32.totalorder %s1518_s28, 0 }
  0x5d   : > { %1421 = vsyncadd (%p1829_p2), [#allocation10], 4294965248 }
  0x5e   : > { %393 = sbr.rel (%p1830_p8) target bundleno = 116 (0x74), region = 68 }
  0x63   : > { %v1453_v0 = vmov 0.0  }
  0x64   : > { %394 = vst [vmem:[#allocation11] sm:$0xff] %v1453_v0 }
  0x65   : > { %395 = vst [vmem:[#allocation11 + $0x8] sm:$0xff] %v1453_v0 }
  0x66   : > { %396 = vst [vmem:[#allocation11 + $0x10] sm:$0xff] %v1453_v0 }
  0x67   : > { %397 = vst [vmem:[#allocation11 + $0x18] sm:$0xff] %v1453_v0 }
  0x68   : > { %398 = vst [vmem:[#allocation11 + $0x20] sm:$0xff] %v1453_v0 }
  0x69   : > { %399 = vst [vmem:[#allocation11 + $0x28] sm:$0xff] %v1453_v0 }
  0x6a   : > { %400 = vst [vmem:[#allocation11 + $0x30] sm:$0xff] %v1453_v0 }
  0x6b   : > { %401 = vst [vmem:[#allocation11 + $0x38] sm:$0xff] %v1453_v0 }
  0x6c   : > { %402 = vst [vmem:[#allocation11 + $0x40] sm:$0xff] %v1453_v0 }
  0x6d   : > { %403 = vst [vmem:[#allocation11 + $0x48] sm:$0xff] %v1453_v0 }
  0x6e   : > { %404 = vst [vmem:[#allocation11 + $0x50] sm:$0xff] %v1453_v0 }
  0x6f   : > { %405 = vst [vmem:[#allocation11 + $0x58] sm:$0xff] %v1453_v0 }
  0x70   : > { %406 = vst [vmem:[#allocation11 + $0x60] sm:$0xff] %v1453_v0 }
  0x71   : > { %407 = vst [vmem:[#allocation11 + $0x68] sm:$0xff] %v1453_v0 }
  0x72   : > { %408 = vst [vmem:[#allocation11 + $0x70] sm:$0xff] %v1453_v0 }
  0x73   : > { %409 = vst [vmem:[#allocation11 + $0x78] sm:$0xff] %v1453_v0 }
  0x74 PF: > { %v441_v1 = vld [vmem:[#allocation5 + $0x78] sm:$0xff]  ;;  %v440_v2 = vld [vmem:[#allocation5 + $0x70] sm:$0xff]  ;;  %v439_v3 = vld [vmem:[#allocation5 + $0x68] sm:$0xff]  ;;  %vm681_vm0 = vcmask 523264   ;;  %s1038_s17 = sshll.u32 %s1518_s28, 6  ;;  %s854_s14 = sshll.u32 %s1675_s20, 4  ;;  %s855_s14 = int_to_ptr.vmem [resolvable:$true] %s854_s14 }
  0x75   : > { %442 = vmatpush.msra.mxu0 %v441_v1  ;;  %v438_v4 = vld [vmem:[#allocation5 + $0x60] sm:$0xff]  ;;  %v437_v6 = vld [vmem:[#allocation5 + $0x58] sm:$0xff]  ;;  %v436_v8 = vld [vmem:[#allocation5 + $0x50] sm:$0xff]  ;;  %s853_s16 = scalar_lea.hbm %s1797_s7, %s1038_s17  ;;  %s828_s9 = scalar_lea.sflag [#allocation13], %s1647_s1 }
  0x76   : > { %v1040_v5 = vld [vmem:[%s1650_s10] sm:$0xff]   ;;  %v435_v9 = vld [vmem:[#allocation5 + $0x48] sm:$0xff]  ;;  %v433_v11 = vld [vmem:[#allocation5 + $0x38] sm:$0xff]  ;;  %s856_s0 = sshll.u32 %s853_s16, 4  ;;  %s1350_s29 = scalar_lea.hbm %s1797_s7, 256  ;;  %s857_s0 = int_to_ptr.hbm [resolvable:$true] %s856_s0 }
  0x77   : > { %443 = vmatpush.msra.mxu0 %v440_v2  ;;  %v1041_v7 = vunpack.c.l.bf16 %v1040_v5  ;;  %v434_v10 = vld [vmem:[#allocation5 + $0x40] sm:$0xff]  ;;  %v1042_v12 = vunpack.c.h.bf16 %v1040_v5  ;;  %v432_v13 = vld [vmem:[#allocation5 + $0x30] sm:$0xff]  ;;  %v431_v14 = vld [vmem:[#allocation5 + $0x28] sm:$0xff]  ;;  %s1344_s8 = sshra.s32 %s857_s0, 4  ;;  %s1345_s8 = int_to_ptr.hbm [resolvable:$true] %s1344_s8 }
  0x78   : > { %v1055_v15 = vld [vmem:[%s1650_s10 + $0x8] sm:$0xff]   ;;  %v430_v16 = vld [vmem:[#allocation5 + $0x20] sm:$0xff]  ;;  %v429_v17 = vld [vmem:[#allocation5 + $0x18] sm:$0xff]  ;;  %s1346_s15 = scalar_lea.hbm %s1345_s8, 64  ;;  %p1351_p0 = scmp.lt.s32.totalorder %s1345_s8, %s1797_s7 }
  0x79   : > { %444 = vmatpush.msra.mxu0 %v439_v3  ;;  %649 = vxpose.xlu0.b32.start [1/8] (short) %v1041_v7, 128  ;;  %v1045_v18 = vunpack.c.l.bf16 %v1055_v15  ;;  %v428_v19 = vld [vmem:[#allocation5 + $0x10] sm:$0xff]  ;;  %v427_v20 = vld [vmem:[#allocation5 + $0x8] sm:$0xff]  ;;  %v426_v21 = vld [vmem:[#allocation5] sm:$0xff]  ;;  %v1046_v22 = vunpack.c.h.bf16 %v1055_v15  ;;  %p1347_p4 = scmp.ne.s32.totalorder %s1345_s8, %s1346_s15  ;;  %p1352_p3 = scmp.lt.s32.totalorder %s1350_s29, %s1346_s15 }
  0x7a   : > { %v1056_v23 = vld [vmem:[%s1650_s10 + $0x10] sm:$0xff]   ;;  %v1683_v26 = vld [vmem:[%s1650_s10 + $0x18] sm:$0xff]   ;;  %v512_v32 = vld [vmem:[#allocation8 + $0x68] sm:$0xff] }
  0x7b   : > { %445 = vmatpush.msra.mxu0 %v438_v4  ;;  %v1049_v24 = vunpack.c.l.bf16 %v1056_v23  ;;  %v1050_v25 = vunpack.c.h.bf16 %v1056_v23  ;;  %v1053_v27 = vunpack.c.l.bf16 %v1683_v26  ;;  %v514_v28 = vld [vmem:[#allocation8 + $0x78] sm:$0xff]  ;;  %v513_v30 = vld [vmem:[#allocation8 + $0x70] sm:$0xff]  ;;  %v528_v33 = vld [vmem:[#allocation9 + $0x68] sm:$0xff]  ;;  %v1054_v36 = vunpack.c.h.bf16 %v1683_v26  ;;  %p1348_p12 = pnand %p1347_p4, %p1573_p7  ;;  %p1353_p10 = por %p1352_p3, %p1351_p0 }
  0x7c   : > { %v530_v29 = vld [vmem:[#allocation9 + $0x78] sm:$0xff]  ;;  %572 = vmatpush.msra.mxu2 %v514_v28  ;;  %v529_v31 = vld [vmem:[#allocation9 + $0x70] sm:$0xff]  ;;  %v511_v34 = vld [vmem:[#allocation8 + $0x60] sm:$0xff] }
  0x7d   : > { %446 = vmatpush.msra.mxu0 %v437_v6  ;;  %531 = vmatpush.msra.mxu1 %v530_v29  ;;  %v527_v35 = vld [vmem:[#allocation9 + $0x60] sm:$0xff]  ;;  %v510_v37 = vld [vmem:[#allocation8 + $0x58] sm:$0xff]  ;;  %v509_v39 = vld [vmem:[#allocation8 + $0x50] sm:$0xff]  ;;  %p1349_p11 = pneg %p1348_p12 }
  0x7e   : > { %573 = vmatpush.msra.mxu2 %v513_v30  ;;  %v526_v38 = vld [vmem:[#allocation9 + $0x58] sm:$0xff]  ;;  %v525_v40 = vld [vmem:[#allocation9 + $0x50] sm:$0xff]  ;;  %v508_v41 = vld [vmem:[#allocation8 + $0x48] sm:$0xff] }
  0x7f   : > { %447 = vmatpush.msra.mxu0 %v436_v8  ;;  %532 = vmatpush.msra.mxu1 %v529_v31  ;;  %v524_v42 = vld [vmem:[#allocation9 + $0x48] sm:$0xff]  ;;  %v507_v43 = vld [vmem:[#allocation8 + $0x40] sm:$0xff]  ;;  %v506_v45 = vld [vmem:[#allocation8 + $0x38] sm:$0xff]  ;;  %p1354_p9 = pnand %p1353_p10, %p1349_p11 }
  0x80   : > { %574 = vmatpush.msra.mxu2 %v512_v32  ;;  %v523_v44 = vld [vmem:[#allocation9 + $0x40] sm:$0xff]  ;;  %v522_v46 = vld [vmem:[#allocation9 + $0x38] sm:$0xff]  ;;  %v505_v47 = vld [vmem:[#allocation8 + $0x30] sm:$0xff] }
  0x81   : > { %448 = vmatpush.msra.mxu0 %v435_v9  ;;  %650 = vxpose.xlu0.b32.cont [2/8] (short) %v1042_v12, 128  ;;  %v521_v48 = vld [vmem:[#allocation9 + $0x30] sm:$0xff]  ;;  %v504_v49 = vld [vmem:[#allocation8 + $0x28] sm:$0xff]  ;;  %v503_v51 = vld [vmem:[#allocation8 + $0x20] sm:$0xff] }
  0x82   : > { %533 = vmatpush.msra.mxu1 %v528_v33  ;;  %575 = vmatpush.msra.mxu2 %v511_v34  ;;  %v520_v50 = vld [vmem:[#allocation9 + $0x28] sm:$0xff]  ;;  %v519_v52 = vld [vmem:[#allocation9 + $0x20] sm:$0xff]  ;;  %v502_v53 = vld [vmem:[#allocation8 + $0x18] sm:$0xff] }
  0x83   : > { %449 = vmatpush.msra.mxu0 %v434_v10  ;;  %v518_v54 = vld [vmem:[#allocation9 + $0x18] sm:$0xff]  ;;  %v501_v55 = vld [vmem:[#allocation8 + $0x10] sm:$0xff]  ;;  %v500_v57 = vld [vmem:[#allocation8 + $0x8] sm:$0xff] }
  0x84   : > { %534 = vmatpush.msra.mxu1 %v527_v35  ;;  %576 = vmatpush.msra.mxu2 %v510_v37  ;;  %v517_v56 = vld [vmem:[#allocation9 + $0x10] sm:$0xff]  ;;  %v516_v58 = vld [vmem:[#allocation9 + $0x8] sm:$0xff]  ;;  %v499_v59 = vld [vmem:[#allocation8] sm:$0xff] }
  0x85   : > { %450 = vmatpush.msra.mxu0 %v433_v11  ;;  %v515_v60 = vld [vmem:[#allocation9] sm:$0xff]  ;;  %v484_v0 = vld [vmem:[%s1661_s21 + $0x8] sm:$0xff]  ;;  %v485_v3 = vld [vmem:[%s1661_s21 + $0x10] sm:$0xff] }
  0x86   : > { %535 = vmatpush.msra.mxu1 %v526_v38  ;;  %577 = vmatpush.msra.mxu2 %v509_v39  ;;  %v483_v61 = vld [vmem:[%s1661_s21] sm:$0xff]  ;;  %v486_v6 = vld [vmem:[%s1661_s21 + $0x18] sm:$0xff]  ;;  %v489_v15 = vld [vmem:[%s1661_s21 + $0x30] sm:$0xff] }
  0x87   : > { %451 = vmatpush.msra.mxu0 %v432_v13  ;;  %v487_v9 = vld [vmem:[%s1661_s21 + $0x20] sm:$0xff] }
  0x88   : > { %536 = vmatpush.msra.mxu1 %v525_v40  ;;  %578 = vmatpush.msra.mxu2 %v508_v41 }
  0x89   : > { %452 = vmatpush.msra.mxu0 %v431_v14  ;;  %651 = vxpose.xlu0.b32.cont [3/8] (short) %v1045_v18, 128 }
  0x8a   : > { %537 = vmatpush.msra.mxu1 %v524_v42  ;;  %579 = vmatpush.msra.mxu2 %v507_v43 }
  0x8b   : > { %453 = vmatpush.msra.mxu0 %v430_v16 }
  0x8c   : > { %538 = vmatpush.msra.mxu1 %v523_v44  ;;  %580 = vmatpush.msra.mxu2 %v506_v45 }
  0x8d   : > { %454 = vmatpush.msra.mxu0 %v429_v17 }
  0x8e   : > { %539 = vmatpush.msra.mxu1 %v522_v46  ;;  %581 = vmatpush.msra.mxu2 %v505_v47 }
  0x8f   : > { %455 = vmatpush.msra.mxu0 %v428_v19 }
  0x90   : > { %540 = vmatpush.msra.mxu1 %v521_v48  ;;  %582 = vmatpush.msra.mxu2 %v504_v49 }
  0x91   : > { %456 = vmatpush.msra.mxu0 %v427_v20  ;;  %652 = vxpose.xlu0.b32.cont [4/8] (short) %v1046_v22, 128 }
  0x92   : > { %541 = vmatpush.msra.mxu1 %v520_v50  ;;  %583 = vmatpush.msra.mxu2 %v503_v51 }
  0x93   : > { %457 = vmatpush.msra.mxu0 %v426_v21 }
  0x94   : > { %458 = vmatmul.f32.vlgmr.msra.gmra.mxu0 %v1041_v7  ;;  %542 = vmatpush.msra.mxu1 %v519_v52 }
  0x95   : > { %584 = vmatpush.msra.mxu2 %v502_v53 }
  0x96   : > { %543 = vmatpush.msra.mxu1 %v518_v54 }
  0x97   : > { %585 = vmatpush.msra.mxu2 %v501_v55 }
  0x98   : > { %544 = vmatpush.msra.mxu1 %v517_v56 }
  0x99   : > { %653 = vxpose.xlu0.b32.cont [5/8] (short) %v1049_v24, 128  ;;  %586 = vmatpush.msra.mxu2 %v500_v57 }
  0x9a   : > { %545 = vmatpush.msra.mxu1 %v516_v58 }
  0x9b   : > { %587 = vmatpush.msra.mxu2 %v499_v59 }
  0x9c   : > { %461 = vmatmul.f32.gmra.mxu0 %v1042_v12  ;;  %546 = vmatpush.msra.mxu1 %v515_v60  ;;  %v488_v12 = vld [vmem:[%s1661_s21 + $0x28] sm:$0xff] }
  0xa1   : > { %654 = vxpose.xlu0.b32.cont [6/8] (short) %v1050_v25, 128 }
  0xa4   : > { %464 = vmatmul.f32.gmra.mxu0 %v1045_v18  ;;  %v490_v18 = vld [vmem:[%s1661_s21 + $0x38] sm:$0xff] }
  0xa9   : > { %655 = vxpose.xlu0.b32.cont [7/8] (short) %v1053_v27, 128 }
  0xac   : > { %467 = vmatmul.f32.gmra.mxu0 %v1046_v22  ;;  %v1179_v22 = vld [vmem:[%s1795_s5] ss:$0 sm:$0xff] }
  0xb1   : > { %656 = vxpose.xlu0.b32.end [8/8] (short) %v1054_v36, 128 }
  0xb4   : > { %470 = vmatmul.f32.gmra.mxu0 %v1049_v24 }
  0xbc   : > { %473 = vmatmul.f32.gmra.mxu0 %v1050_v25 }
  0xc4   : > { %476 = vmatmul.f32.gmra.mxu0 %v1053_v27 }
  0xcc   : > { %479 = vmatmul.f32.gmra.mxu0 %v1054_v36 }
 0x111   : > { %v459_v62 = vpop.f32.mrf.mxu0 }
 0x112   : > { %588 = vmatmul.f32.vlgmr.msra.gmra.mxu2 %v459_v62  ;;  %v491_v63 = vmul.f32 %v483_v61, %v459_v62 }
 0x114   : > { %547 = vmatmul.f32.vlgmr.msra.gmra.mxu1 %v491_v63 }
 0x119   : > { %v462_v1 = vpop.f32.mrf.mxu0 }
 0x11a   : > { %591 = vmatmul.f32.gmra.mxu2 %v462_v1  ;;  %v492_v2 = vmul.f32 %v484_v0, %v462_v1 }
 0x11c   : > { %550 = vmatmul.f32.gmra.mxu1 %v492_v2 }
 0x11d   : > { %v1706_v31 = vpop.trf.xlu0 }
 0x121   : > { %v465_v4 = vpop.f32.mrf.mxu0 }
 0x122   : > { %594 = vmatmul.f32.gmra.mxu2 %v465_v4  ;;  %v493_v5 = vmul.f32 %v485_v3, %v465_v4 }
 0x124   : > { %553 = vmatmul.f32.gmra.mxu1 %v493_v5 }
 0x125   : > { %v1709_v36 = vpop.trf.xlu0 }
 0x129   : > { %v468_v7 = vpop.f32.mrf.mxu0 }
 0x12a   : > { %597 = vmatmul.f32.gmra.mxu2 %v468_v7  ;;  %v494_v8 = vmul.f32 %v486_v6, %v468_v7 }
 0x12c   : > { %556 = vmatmul.f32.gmra.mxu1 %v494_v8 }
 0x12d   : > { %v667_v43 = vpop.trf.xlu0 }
 0x131   : > { %v471_v10 = vpop.f32.mrf.mxu0 }
 0x132   : > { %600 = vmatmul.f32.gmra.mxu2 %v471_v10  ;;  %v495_v11 = vmul.f32 %v487_v9, %v471_v10 }
 0x134   : > { %559 = vmatmul.f32.gmra.mxu1 %v495_v11 }
 0x135   : > { %v668_v49 = vpop.trf.xlu0 }
 0x139   : > { %v474_v13 = vpop.f32.mrf.mxu0 }
 0x13a   : > { %603 = vmatmul.f32.gmra.mxu2 %v474_v13  ;;  %v496_v14 = vmul.f32 %v488_v12, %v474_v13 }
 0x13c   : > { %562 = vmatmul.f32.gmra.mxu1 %v496_v14 }
 0x13d   : > { %v669_v54 = vpop.trf.xlu0 }
 0x141   : > { %v477_v16 = vpop.f32.mrf.mxu0 }
 0x142   : > { %606 = vmatmul.f32.gmra.mxu2 %v477_v16  ;;  %v497_v17 = vmul.f32 %v489_v15, %v477_v16 }
 0x144   : > { %565 = vmatmul.f32.gmra.mxu1 %v497_v17 }
 0x145   : > { %v670_v59 = vpop.trf.xlu0 }
 0x149   : > { %v480_v19 = vpop.f32.mrf.mxu0 }
 0x14a   : > { %609 = vmatmul.f32.gmra.mxu2 %v480_v19  ;;  %v498_v20 = vmul.f32 %v490_v18, %v480_v19 }
 0x14c   : > { %568 = vmatmul.f32.gmra.mxu1 %v498_v20 }
 0x14d   : > { %v671_v60 = vpop.trf.xlu0 }
 0x155   : > { %v672_v61 = vpop.trf.xlu0 }
 0x15d   : > { %v673_v62 = vpop.trf.xlu0 }
 0x165   : > { %v674_v63 = vpop.trf.xlu0 }
 0x16d   : > { %v675_v0 = vpop.trf.xlu0 }
 0x175   : > { %v676_v1 = vpop.trf.xlu0 }
 0x17d   : > { %v677_v2 = vpop.trf.xlu0 }
 0x185   : > { %v678_v3 = vpop.trf.xlu0 }
 0x18d   : > { %v679_v4 = vpop.trf.xlu0 }
 0x191   : > { %v548_v21 = vpop.f32.mrf.mxu1 }
 0x195   : > { %v589_v23 = vpop.f32.mrf.mxu2  ;;  %v680_v5 = vpop.trf.xlu0 }
 0x196   : > { %v590_v24 = vadd.f32 %v589_v23, %v548_v21 }
 0x198   : > { %v1698_v25 = vadd.f32 %v1179_v22, %v590_v24 }
 0x199   : > { %v551_v26 = vpop.f32.mrf.mxu1 }
 0x19a   : > { %625 = vst [vmem:[%s1675_s20] sm:$0xff] %v1698_v25 }
 0x19d   : > { %v592_v27 = vpop.f32.mrf.mxu2 }
 0x19e   : > { %v593_v28 = vadd.f32 %v592_v27, %v551_v26 }
 0x1a0   : > { %v1702_v29 = vadd.f32 %v1179_v22, %v593_v28 }
 0x1a1   : > { %v554_v30 = vpop.f32.mrf.mxu1 }
 0x1a2   : > { %626 = vst [vmem:[%s1675_s20 + $0x8] sm:$0xff] %v1702_v29 }
 0x1a5   : > { %v595_v32 = vpop.f32.mrf.mxu2 }
 0x1a6   : > { %v596_v33 = vadd.f32 %v595_v32, %v554_v30 }
 0x1a8   : > { %v619_v34 = vadd.f32 %v1179_v22, %v596_v33 }
 0x1a9   : > { %v557_v35 = vpop.f32.mrf.mxu1 }
 0x1aa   : > { %627 = vst [vmem:[%s1675_s20 + $0x10] sm:$0xff] %v619_v34 }
 0x1ad   : > { %v598_v37 = vpop.f32.mrf.mxu2 }
 0x1ae   : > { %v599_v38 = vadd.f32 %v598_v37, %v557_v35 }
 0x1b0   : > { %v620_v39 = vadd.f32 %v1179_v22, %v599_v38 }
 0x1b1   : > { %v560_v40 = vpop.f32.mrf.mxu1 }
 0x1b2   : > { %628 = vst [vmem:[%s1675_s20 + $0x18] sm:$0xff] %v620_v39 }
 0x1b5   : > { %v601_v41 = vpop.f32.mrf.mxu2 }
 0x1b6   : > { %v602_v42 = vadd.f32 %v601_v41, %v560_v40 }
 0x1b8   : > { %v621_v44 = vadd.f32 %v1179_v22, %v602_v42 }
 0x1b9   : > { %v563_v45 = vpop.f32.mrf.mxu1 }
 0x1ba   : > { %629 = vst [vmem:[%s1675_s20 + $0x20] sm:$0xff] %v621_v44 }
 0x1bd   : > { %v604_v46 = vpop.f32.mrf.mxu2 }
 0x1be   : > { %v605_v47 = vadd.f32 %v604_v46, %v563_v45 }
 0x1c0   : > { %v622_v48 = vadd.f32 %v1179_v22, %v605_v47 }
 0x1c1   : > { %v566_v50 = vpop.f32.mrf.mxu1 }
 0x1c2   : > { %630 = vst [vmem:[%s1675_s20 + $0x28] sm:$0xff] %v622_v48 }
 0x1c5   : > { %v607_v51 = vpop.f32.mrf.mxu2 }
 0x1c6   : > { %v608_v52 = vadd.f32 %v607_v51, %v566_v50 }
 0x1c8   : > { %v623_v53 = vadd.f32 %v1179_v22, %v608_v52 }
 0x1c9   : > { %v569_v55 = vpop.f32.mrf.mxu1 }
 0x1ca   : > { %631 = vst [vmem:[%s1675_s20 + $0x30] sm:$0xff] %v623_v53 }
 0x1cd   : > { %v610_v56 = vpop.f32.mrf.mxu2 }
 0x1ce   : > { %v611_v57 = vadd.f32 %v610_v56, %v569_v55 }
 0x1d0   : > { %v624_v58 = vadd.f32 %v1179_v22, %v611_v57 }
 0x1d2   : > { %632 = vst [vmem:[%s1675_s20 + $0x38] sm:$0xff] %v624_v58  ;;  %738 = vmatpush.msrb.mxu0 %v624_v58  ;;  %1058 = vmatpush.msrb.mxu1 %v624_v58 }
 0x1d3   : > { %1059 = vmatpush.msrb.mxu2 %v624_v58  ;;  %1060 = vmatpush.msra.mxu3 %v624_v58 }
 0x1d4   : > { %739 = vmatpush.msrb.mxu0 %v623_v53  ;;  %1061 = vmatpush.msrb.mxu1 %v623_v53 }
 0x1d5   : > { %1062 = vmatpush.msrb.mxu2 %v623_v53  ;;  %1063 = vmatpush.msra.mxu3 %v623_v53 }
 0x1d6   : > { %740 = vmatpush.msrb.mxu0 %v622_v48  ;;  %1064 = vmatpush.msrb.mxu1 %v622_v48 }
 0x1d7   : > { %1065 = vmatpush.msrb.mxu2 %v622_v48  ;;  %1066 = vmatpush.msra.mxu3 %v622_v48 }
 0x1d8   : > { %741 = vmatpush.msrb.mxu0 %v621_v44  ;;  %1067 = vmatpush.msrb.mxu1 %v621_v44 }
 0x1d9   : > { %1068 = vmatpush.msrb.mxu2 %v621_v44  ;;  %1069 = vmatpush.msra.mxu3 %v621_v44 }
 0x1da   : > { %742 = vmatpush.msrb.mxu0 %v620_v39  ;;  %1070 = vmatpush.msrb.mxu1 %v620_v39 }
 0x1db   : > { %1071 = vmatpush.msrb.mxu2 %v620_v39  ;;  %1072 = vmatpush.msra.mxu3 %v620_v39 }
 0x1dc   : > { %743 = vmatpush.msrb.mxu0 %v619_v34  ;;  %1073 = vmatpush.msrb.mxu1 %v619_v34 }
 0x1dd   : > { %1074 = vmatpush.msrb.mxu2 %v619_v34  ;;  %1075 = vmatpush.msra.mxu3 %v619_v34 }
 0x1de   : > { %744 = vmatpush.msrb.mxu0 %v1702_v29  ;;  %1076 = vmatpush.msrb.mxu1 %v1702_v29 }
 0x1df   : > { %1077 = vmatpush.msrb.mxu2 %v1702_v29  ;;  %1078 = vmatpush.msra.mxu3 %v1702_v29 }
 0x1e0   : > { %745 = vmatpush.msrb.mxu0 %v1698_v25  ;;  %1079 = vmatpush.msrb.mxu1 %v1698_v25 }
 0x1e1   : > { %1080 = vmatpush.msrb.mxu2 %v1698_v25  ;;  %1081 = vmatpush.msra.mxu3 %v1698_v25 }
 0x1e2   : > { %1013 = vmatmul.msk.f32.vlgmr.msrb.gmra.mxu0 %vm681_vm0, %v1706_v31  ;;  %1014 = vmatmul.msk.f32.vlgmr.msrb.gmra.mxu1 %vm681_vm0, %v1709_v36 }
 0x1e3   : > { %1016 = vmatmul.msk.f32.vlgmr.msrb.gmra.mxu2 %vm681_vm0, %v668_v49  ;;  %1017 = vmatmul.msk.f32.vlgmr.msra.gmra.mxu3 %vm681_vm0, %v669_v54 }
 0x1ea   : > { %1015 = vmatmul.msk.f32.gmra.mxu1 %vm681_vm0, %v667_v43 }
 0x1eb   : > { %1018 = vmatmul.msk.f32.gmra.mxu3 %vm681_vm0, %v670_v59 }
 0x1f3   : > { %1019 = vmatmul.msk.f32.gmra.mxu3 %vm681_vm0, %v671_v60 }
 0x1fb   : > { %1020 = vmatmul.msk.f32.gmra.mxu3 %vm681_vm0, %v672_v61 }
 0x203   : > { %1021 = vmatmul.msk.f32.gmra.mxu3 %vm681_vm0, %v673_v62 }
 0x20b   : > { %1022 = vmatmul.msk.f32.gmra.mxu3 %vm681_vm0, %v674_v63 }
 0x213   : > { %1023 = vmatmul.msk.f32.gmra.mxu3 %vm681_vm0, %v675_v0 }
 0x21b   : > { %1024 = vmatmul.msk.f32.gmra.mxu3 %vm681_vm0, %v676_v1 }
 0x223   : > { %1025 = vmatmul.msk.f32.gmra.mxu3 %vm681_vm0, %v677_v2 }
 0x22b   : > { %1026 = vmatmul.msk.f32.gmra.mxu3 %vm681_vm0, %v678_v3 }
 0x233   : > { %1027 = vmatmul.msk.f32.gmra.mxu3 %vm681_vm0, %v679_v4 }
 0x23b   : > { %1028 = vmatmul.msk.f32.gmra.mxu3 %vm681_vm0, %v680_v5 }
 0x23c   : > { %1357 = shalt.err (!%p1354_p9)
}
 0x23d   : > { %s1454_s1 = smov 128   ;;  %s1455_s12 = smov 8   ;;  %v633_v6 = vld [vmem:[#allocation11] sm:$0xff]  ;;  %v634_v7 = vld [vmem:[#allocation11 + $0x8] sm:$0xff]  ;;  %v636_v12 = vld [vmem:[#allocation11 + $0x18] sm:$0xff] }
 0x23e   : > { %1100 = dma.vmem_to_hbm [thread:$0]  (%p1573_p7), %s855_s14, 1024, %s857_s0, %s828_s9, %s1454_s1, %s1454_s1, %s1455_s12   ;;  %v637_v13 = vld [vmem:[#allocation11 + $0x20] sm:$0xff]  ;;  %v635_v14 = vld [vmem:[#allocation11 + $0x10] sm:$0xff]  ;;  %v638_v21 = vld [vmem:[#allocation11 + $0x28] sm:$0xff] }
 0x23f   : > { %v639_v24 = vld [vmem:[#allocation11 + $0x30] sm:$0xff]  ;;  %v640_v27 = vld [vmem:[#allocation11 + $0x38] sm:$0xff]  ;;  %v641_v30 = vld [vmem:[#allocation11 + $0x40] sm:$0xff]  ;;  %s1456_s22 = smov [#allocation11]   ;;  %s839_s13 = sshll.u32 %s1796_s6, 4  ;;  %s840_s13 = int_to_ptr.hbm [resolvable:$true] %s839_s13 }
 0x240   : > { %v642_v33 = vld [vmem:[#allocation11 + $0x48] sm:$0xff]  ;;  %v643_v36 = vld [vmem:[#allocation11 + $0x50] sm:$0xff]  ;;  %v644_v39 = vld [vmem:[#allocation11 + $0x58] sm:$0xff]  ;;  %s837_s21 = sshll.u32 %s1456_s22, 4  ;;  %p1831_p7 = scmp.eq.s32.totalorder %s1518_s28, 3  ;;  %s838_s21 = int_to_ptr.vmem [resolvable:$true] %s837_s21 }
 0x241   : > { %v645_v42 = vld [vmem:[#allocation11 + $0x60] sm:$0xff]  ;;  %v646_v45 = vld [vmem:[#allocation11 + $0x68] sm:$0xff]  ;;  %v647_v48 = vld [vmem:[#allocation11 + $0x70] sm:$0xff] }
 0x242   : > { %v648_v51 = vld [vmem:[#allocation11 + $0x78] sm:$0xff]  ;;  %p1832_p13 = pmov %p1831_p7 }
 0x25f   : > { %v747_v8 = vpop.f32.mrf.mxu0  ;;  %v750_v9 = vpop.f32.mrf.mxu1 }
 0x260   : > { %v795_v10 = vadd.f32 %v747_v8, %v633_v6  ;;  %v796_v11 = vadd.f32 %v750_v9, %v634_v7 }
 0x262   : > { %811 = vst [vmem:[#allocation11] sm:$0xff] %v795_v10 }
 0x263   : > { %812 = vst [vmem:[#allocation11 + $0x8] sm:$0xff] %v796_v11 }
 0x266   : > { %v756_v15 = vpop.f32.mrf.mxu2  ;;  %v759_v16 = vpop.f32.mrf.mxu3 }
 0x267   : > { %v798_v17 = vadd.f32 %v756_v15, %v636_v12  ;;  %v799_v18 = vadd.f32 %v759_v16, %v637_v13  ;;  %v753_v19 = vpop.f32.mrf.mxu1 }
 0x268   : > { %v797_v20 = vadd.f32 %v753_v19, %v635_v14 }
 0x269   : > { %814 = vst [vmem:[#allocation11 + $0x18] sm:$0xff] %v798_v17 }
 0x26a   : > { %815 = vst [vmem:[#allocation11 + $0x20] sm:$0xff] %v799_v18 }
 0x26b   : > { %813 = vst [vmem:[#allocation11 + $0x10] sm:$0xff] %v797_v20 }
 0x26e   : > { %v762_v22 = vpop.f32.mrf.mxu3 }
 0x26f   : > { %v800_v23 = vadd.f32 %v762_v22, %v638_v21 }
 0x271   : > { %816 = vst [vmem:[#allocation11 + $0x28] sm:$0xff] %v800_v23 }
 0x276   : > { %v765_v25 = vpop.f32.mrf.mxu3 }
 0x277   : > { %v801_v26 = vadd.f32 %v765_v25, %v639_v24 }
 0x279   : > { %817 = vst [vmem:[#allocation11 + $0x30] sm:$0xff] %v801_v26 }
 0x27e   : > { %v768_v28 = vpop.f32.mrf.mxu3 }
 0x27f   : > { %v802_v29 = vadd.f32 %v768_v28, %v640_v27 }
 0x281   : > { %818 = vst [vmem:[#allocation11 + $0x38] sm:$0xff] %v802_v29 }
 0x286   : > { %v771_v31 = vpop.f32.mrf.mxu3 }
 0x287   : > { %v803_v32 = vadd.f32 %v771_v31, %v641_v30 }
 0x289   : > { %819 = vst [vmem:[#allocation11 + $0x40] sm:$0xff] %v803_v32 }
 0x28e   : > { %v774_v34 = vpop.f32.mrf.mxu3 }
 0x28f   : > { %v804_v35 = vadd.f32 %v774_v34, %v642_v33 }
 0x291   : > { %820 = vst [vmem:[#allocation11 + $0x48] sm:$0xff] %v804_v35 }
 0x296   : > { %v777_v37 = vpop.f32.mrf.mxu3 }
 0x297   : > { %v805_v38 = vadd.f32 %v777_v37, %v643_v36 }
 0x299   : > { %821 = vst [vmem:[#allocation11 + $0x50] sm:$0xff] %v805_v38 }
 0x29e   : > { %v780_v40 = vpop.f32.mrf.mxu3 }
 0x29f   : > { %v806_v41 = vadd.f32 %v780_v40, %v644_v39 }
 0x2a1   : > { %822 = vst [vmem:[#allocation11 + $0x58] sm:$0xff] %v806_v41 }
 0x2a6   : > { %v783_v43 = vpop.f32.mrf.mxu3 }
 0x2a7   : > { %v807_v44 = vadd.f32 %v783_v43, %v645_v42 }
 0x2a9   : > { %823 = vst [vmem:[#allocation11 + $0x60] sm:$0xff] %v807_v44 }
 0x2ae   : > { %v786_v46 = vpop.f32.mrf.mxu3 }
 0x2af   : > { %v808_v47 = vadd.f32 %v786_v46, %v646_v45 }
 0x2b1   : > { %824 = vst [vmem:[#allocation11 + $0x68] sm:$0xff] %v808_v47 }
 0x2b6   : > { %v789_v49 = vpop.f32.mrf.mxu3 }
 0x2b7   : > { %v809_v50 = vadd.f32 %v789_v49, %v647_v48 }
 0x2b9   : > { %825 = vst [vmem:[#allocation11 + $0x70] sm:$0xff] %v809_v50 }
 0x2be   : > { %v792_v52 = vpop.f32.mrf.mxu3 }
 0x2bf   : > { %v810_v53 = vadd.f32 %v792_v52, %v648_v51 }
 0x2c1   : > { %826 = vst [vmem:[#allocation11 + $0x78] sm:$0xff] %v810_v53 }
 0x2c2   : > { %1099 = dma.vmem_to_hbm [thread:$0]  (%p1831_p7), %s838_s21, 2048, %s840_s13, [#allocation4], %s1454_s1, %s1454_s1, %s1455_s12  }
 0x2c3   : > { %1423 = dma.done.wait (%p1832_p13), [#allocation4], 2048   ;;  %p1833_p5 = pmov %p1831_p7 }
 0x2c5   : > { %1425 = vsyncadd (%p1833_p5), [#allocation4], 4294965248 }
 0x2c6 PF: > { %p1134_p1 = scmp.ge.s32.totalorder %s1444_s27, 2  ;;  %s876_s18 = sand.u32 1, %s1432_s24  }
 0x2c7   : > { %s877_s26 = scalar_lea.sflag [#allocation13], %s876_s18 }
 0x2c8   : > { %p1122_p2 = pnand %p1134_p1, %p1532_p6 }
 0x2ca   : > { %p1123_p8 = pneg %p1122_p2 }
 0x2cc   : > { %1427 = dma.done.wait (%p1123_p8), %s877_s26, 1024  }
 0x2cd   : > { %1429 = vsyncadd (%p1123_p8), %s877_s26, 4294966272  ;;  %s1835_s27 = sld [smem:[#allocation23_spill]]  ;;  %s1838_s24 = smov %s1436_s25 }
 0x2ce   : > { %s1836_s16 = sld [smem:[#allocation21_spill]] }
 0x2cf   : > { %s1837_s26 = sld [smem:[#allocation24_spill]] }
 0x2d3   : > { %p24_p4 = scmp.ge.s32.totalorder %s1835_s27, 6  }
 0x2d4   : > { %s1839_s25 = smov %s1836_s16 }
 0x2d5   :  { %26 = sbr.rel (!%p24_p4) target bundleno = 11 (0xb), region = 125 }
 0x2da   :  { %883 = vsyncpa [#allocation3], 1 }
 0x2db   :  { %885 = vsyncpa [#allocation3 + $0x1], 1 }
 0x2dc   :  { %886 = vsyncpa [#allocation6], 1 }
 0x2dd   :  { %887 = vsyncpa [#allocation10], 1 }
 0x2de   :  { %888 = vsyncpa [#allocation4], 1 }
 0x2df   :  { %890 = vsyncpa [#allocation4 + $0x1], 1 }
 0x2e0   :  { %891 = vsyncpa [#allocation13], 1 }
 0x2e1   :  { %893 = vsyncpa [#allocation13 + $0x1], 1 }

</bundles_post_ra>
